<compile_context>
chip_gen: v7x
topology: tpu7x:2x2x1
jax: 0.10.0
libtpu: 0.0.40
codegen_flags: <defaults>
</compile_context>

<pallas_src>
import jax
import jax.numpy as jnp
from jax import lax
from jax.experimental import pallas as pl
from jax.experimental.pallas import tpu as pltpu


def _round_up(x, m):
    return ((x + m - 1) // m) * m


def _triple(s):
    if isinstance(s, (tuple, list)):
        return tuple(int(v) for v in s)
    return (int(s),) * 3


# -----------------------------------------------------------------------------
# Pallas kernel: fused relu(P @ W + b)
#   bf16 operands, f32 accumulation (VMEM scratch), bf16 output store.
#   Grid = (M tiles ["parallel"], K tiles ["arbitrary"]).
# -----------------------------------------------------------------------------
def _matmul_bias_relu_kernel(p_ref, w_ref, b_ref, o_ref, acc_ref):
    @pl.when(pl.program_id(1) == 0)
    def _init():
        acc_ref[...] = jnp.zeros_like(acc_ref)

    acc_ref[...] += jnp.dot(p_ref[...], w_ref[...],
                            preferred_element_type=jnp.float32)

    @pl.when(pl.program_id(1) == pl.num_programs(1) - 1)
    def _finalize():
        o_ref[...] = jnp.maximum(acc_ref[...] + b_ref[...], 0.0).astype(o_ref.dtype)


def matmul_bias_relu(p, w, b, *, tm_target=1024, tk_target=2048):
    """relu(p @ w + b).  p: (M, K), w: (K, N), b: (N,).  Returns bf16 (M, N)."""
    M, K = p.shape
    N = w.shape[1]

    # K tiling: resident up to tk_target, otherwise a K grid axis (keeps the
    # double-buffered working set inside v7x's 32 MiB scoped VMEM for big K).
    Kp = _round_up(K, 128)
    TK = Kp if Kp <= tk_target else tk_target
    Kp = _round_up(Kp, TK)
    Np = _round_up(N, 128)                      # lane-dense, unmasked stores
    TM = tm_target if M >= tm_target else _round_up(M, 8)
    Mp = _round_up(M, TM)

    p_pad = jnp.pad(p.astype(jnp.bfloat16), ((0, Mp - M), (0, Kp - K)))
    w_pad = jnp.pad(w.astype(jnp.bfloat16), ((0, Kp - K), (0, Np - N)))
    b_pad = jnp.pad(b.astype(jnp.float32), (0, Np - N)).reshape(1, Np)

    grid = (Mp // TM, Kp // TK)

    # Cost estimate from the TRUE problem size (not the padded one).
    flops = 2 * M * K * N
    bytes_accessed = M * K * 2 + K * N * 2 + M * N * 2 + N * 4

    out = pl.pallas_call(
        _matmul_bias_relu_kernel,
        out_shape=jax.ShapeDtypeStruct((Mp, Np), jnp.bfloat16),
        grid_spec=pltpu.PrefetchScalarGridSpec(
            num_scalar_prefetch=0,
            grid=grid,
            in_specs=[
                pl.BlockSpec((TM, TK), lambda i, k: (i, k)),   # patch rows
                pl.BlockSpec((TK, Np), lambda i, k: (k, 0)),   # weights
                pl.BlockSpec((1, Np), lambda i, k: (0, 0)),    # bias (resident)
            ],
            out_specs=pl.BlockSpec((TM, Np), lambda i, k: (i, 0)),
            scratch_shapes=[pltpu.VMEM((TM, Np), jnp.float32)],
        ),
        compiler_params=pltpu.CompilerParams(
            dimension_semantics=("parallel", "arbitrary")),
        cost_estimate=pl.CostEstimate(
            flops=flops, transcendentals=0, bytes_accessed=bytes_accessed),
    )(p_pad, w_pad, b_pad)
    return out[:M, :N]


# -----------------------------------------------------------------------------
# Conv layers as im2col + Pallas GEMM
# -----------------------------------------------------------------------------
def _im2col_3d(x, ksizes, strides):
    """x: (B, C, T, H, W) -> (B*To*Ho*Wo, C*kt*kh*kw) patches.

    Column order is (c, dt, dh, dw) row-major; row order is (b, to, ho, wo).
    """
    B, C, T, H, W = x.shape
    kt, kh, kw = ksizes
    st, sh, sw = strides
    To = (T - kt) // st + 1
    Ho = (H - kh) // sh + 1
    Wo = (W - kw) // sw + 1
    it = jnp.arange(To)[:, None] * st + jnp.arange(kt)[None, :]   # (To, kt)
    ih = jnp.arange(Ho)[:, None] * sh + jnp.arange(kh)[None, :]   # (Ho, kh)
    iw = jnp.arange(Wo)[:, None] * sw + jnp.arange(kw)[None, :]   # (Wo, kw)
    p = x[:, :, it]                 # (B, C, To, kt, H, W)
    p = p[:, :, :, :, ih]           # (B, C, To, kt, Ho, kh, W)
    p = p[:, :, :, :, :, :, iw]     # (B, C, To, kt, Ho, kh, Wo, kw)
    p = p.transpose(0, 2, 4, 6, 1, 3, 5, 7)   # (B, To, Ho, Wo, C, kt, kh, kw)
    return p.reshape(B * To * Ho * Wo, C * kt * kh * kw), (To, Ho, Wo)


def conv3d_relu(x, weight, bias, stride):
    """PyTorch nn.Conv3d(stride=stride) + ReLU.  weight: (Cout, Cin, k, k, k)."""
    cout, k = weight.shape[0], weight.shape[2]
    s = _triple(stride)
    B = x.shape[0]
    patches, (to, ho, wo) = _im2col_3d(x.astype(jnp.bfloat16), (k, k, k), s)
    w_mat = weight.reshape(cout, -1).T                       # (Cin*k^3, Cout)
    y = matmul_bias_relu(patches, w_mat, bias)               # (B*to*ho*wo, Cout)
    return y.reshape(B, to, ho, wo, cout).transpose(0, 4, 1, 2, 3)


def _conv_transpose3d_subpixel(z, weight, bias, strides):
    """ConvTranspose3d + ReLU via sub-pixel (phase) GEMM (requires k % stride == 0).

    y[co, q*s + r] = sum_{ci, j} z_pad[ci, q + j] * W[ci, co, (m-1-j)*s + r],
    with m = k//s and z_pad = z zero-padded by (m-1) on each side, followed by
    a depth-to-space of the (co, r) output columns.
    """
    cin, cout, k = weight.shape[0], weight.shape[1], weight.shape[2]
    st, sh, sw = strides
    mt, mh, mw = k // st, k // sh, k // sw
    B = z.shape[0]
    zp = jnp.pad(z.astype(jnp.bfloat16),
                 ((0, 0), (0, 0),
                  (mt - 1, mt - 1), (mh - 1, mh - 1), (mw - 1, mw - 1)))
    patches, (qt, qh, qw) = _im2col_3d(zp, (mt, mh, mw), (1, 1, 1))
    # Regroup weights: (ci, co, dt*st+rt, ...) -> [(ci, jt, jh, jw), (co, rt, rh, rw)]
    w_r = weight.reshape(cin, cout, mt, st, mh, sh, mw, sw)
    w_f = jnp.flip(w_r, axis=(2, 4, 6))                       # j = m-1-d flip
    w_mat = w_f.transpose(0, 2, 4, 6, 1, 3, 5, 7).reshape(
        cin * mt * mh * mw, cout * st * sh * sw)
    b_sub = jnp.repeat(bias, st * sh * sw)                    # bias[co] per phase
    y = matmul_bias_relu(patches, w_mat, b_sub)   # (B*qt*qh*qw, cout*st*sh*sw)
    # depth-to-space
    y = y.reshape(B, qt, qh, qw, cout, st, sh, sw)
    y = y.transpose(0, 4, 1, 5, 2, 6, 3, 7)
    return y.reshape(B, cout, qt * st, qh * sh, qw * sw)


def _conv_transpose3d_dilated(z, weight, bias, strides):
    """Fallback: stride-1 conv of the zero-dilated, (k-1)-padded input with the
    spatially flipped kernel (used when stride does not divide the kernel)."""
    cout, k = weight.shape[1], weight.shape[2]
    st, sh, sw = strides
    B, C, Ti, Hi, Wi = z.shape
    Td, Hd, Wd = (Ti - 1) * st + 1, (Hi - 1) * sh + 1, (Wi - 1) * sw + 1
    zd = jnp.zeros((B, C, Td, Hd, Wd), jnp.bfloat16)
    zd = zd.at[:, :, ::st, ::sh, ::sw].set(z.astype(jnp.bfloat16))
    zp = jnp.pad(zd, ((0, 0), (0, 0),
                      (k - 1, k - 1), (k - 1, k - 1), (k - 1, k - 1)))
    w_flip = jnp.flip(weight, axis=(2, 3, 4)).transpose(1, 0, 2, 3, 4)
    patches, (to, ho, wo) = _im2col_3d(zp, (k, k, k), (1, 1, 1))
    w_mat = w_flip.reshape(cout, -1).T
    y = matmul_bias_relu(patches, w_mat, bias)
    return y.reshape(B, to, ho, wo, cout).transpose(0, 4, 1, 2, 3)


def conv_transpose3d_relu(z, weight, bias, stride):
    """PyTorch nn.ConvTranspose3d(stride=stride) + ReLU.  weight: (Cin, Cout, k, k, k)."""
    k = weight.shape[2]
    st, sh, sw = _triple(stride)
    if k % st == 0 and k % sh == 0 and k % sw == 0:
        return _conv_transpose3d_subpixel(z, weight, bias, (st, sh, sw))
    return _conv_transpose3d_dilated(z, weight, bias, (st, sh, sw))


# -----------------------------------------------------------------------------
# Model definition (mirrors TemporalConvAE_week5)
# -----------------------------------------------------------------------------
def layer_specs(inchannels, nlayers, layerchans):
    c1 = c2 = c3 = c4 = c5 = layerchans
    conv_params = [
        [(inchannels, c1, 8, 4)],
        [(inchannels, c1, 8, (2, 4, 4)), (c1, c2, 7, (2, 2, 2))],
        [(inchannels, c1, 8, 2), (c1, c2, 7, (1, 2, 2)), (c2, c3, 8, (1, 2, 2))],
        [(inchannels, c1, 8, 2), (c1, c2, 7, (1, 2, 2)), (c2, c3, 8, (1, 2, 2)),
         (c3, c4, 7, 1)],
        [(inchannels, c1, 8, 2), (c1, c2, 7, (1, 2, 2)), (c2, c3, 7, 1),
         (c3, c4, 8, 1), (c4, c5, 7, 1)],
    ]
    return conv_params[nlayers - 1]


def init_params(key, specs):
    """Deterministic init mirroring PyTorch's uniform(+-1/sqrt(fan_in))."""
    enc, dec = [], []
    for (cin, cout, k, _s) in specs:
        key, kw, kb = jax.random.split(key, 3)
        bound = 1.0 / float(cin * k ** 3) ** 0.5
        W = jax.random.uniform(kw, (cout, cin, k, k, k), jnp.float32, -bound, bound)
        b = jax.random.uniform(kb, (cout,), jnp.float32, -bound, bound)
        enc.append((W, b))
    for (cin, cout, k, _s) in specs[::-1]:
        key, kw, kb = jax.random.split(key, 3)
        bound = 1.0 / float(cout * k ** 3) ** 0.5
        # ConvTranspose3d(in=cout, out=cin): weight (cout, cin, k,k,k), bias (cin,)
        Wt = jax.random.uniform(kw, (cout, cin, k, k, k), jnp.float32, -bound, bound)
        b = jax.random.uniform(kb, (cin,), jnp.float32, -bound, bound)
        dec.append((Wt, b))
    return enc, dec


def temporal_conv_ae_forward(x, enc_params, dec_params, specs):
    """Pallas forward: Conv3d+ReLU encoder stack, ConvTranspose3d+ReLU decoder stack."""
    h = x
    for (W, b), (_cin, _cout, _k, s) in zip(enc_params, specs):
        h = conv3d_relu(h, W, b, s)
    # (self.latent_dim = prod(h.shape[-3:]) is bookkeeping only in PyTorch)
    for (Wt, b), (_cin, _cout, _k, s) in zip(dec_params, specs[::-1]):
        h = conv_transpose3d_relu(h, Wt, b, s)
    return h.astype(jnp.float32)


def reference_forward(x, enc_params, dec_params, specs):
    """Pure-JAX (XLA conv) f32 reference of the PyTorch forward, for verification."""
    dn = ("NCDHW", "OIDHW", "NCDHW")
    h = x
    for (W, b), (_cin, _cout, k, s) in zip(enc_params, specs):
        h = lax.conv_general_dilated(h, W, window_strides=_triple(s),
                                     padding="VALID", dimension_numbers=dn)
        h = jnp.maximum(h + b[None, :, None, None, None], 0.0)
    for (Wt, b), (_cin, _cout, k, s) in zip(dec_params, specs[::-1]):
        w_flip = jnp.flip(Wt, axis=(2, 3, 4)).transpose(1, 0, 2, 3, 4)
        h = lax.conv_general_dilated(h, w_flip, window_strides=(1, 1, 1),
                                     padding=[(k - 1, k - 1)] * 3,
                                     lhs_dilation=_triple(s),
                                     dimension_numbers=dn)
        h = jnp.maximum(h + b[None, :, None, None, None], 0.0)
    return h


if __name__ == "__main__":
    # Module config: inchannels=2, nlayers=1, layerchans=4; input (B, C, T, H, W)
    inchannels = 2
    layerchans = 4
    nlayers = 1
    batch = 2
    T = H = W = 16

    specs = layer_specs(inchannels, nlayers, layerchans)
    key = jax.random.PRNGKey(0)
    kx, kp = jax.random.split(key)
    x = jax.random.normal(kx, (batch, inchannels, T, H, W), dtype=jnp.float32)
    enc_params, dec_params = init_params(kp, specs)

    fwd = jax.jit(lambda xx: temporal_conv_ae_forward(xx, enc_params, dec_params, specs))
    out = jax.block_until_ready(fwd(x))

    ref = reference_forward(x, enc_params, dec_params, specs)
    assert out.shape == ref.shape == (batch, inchannels, T, H, W), out.shape
    # bf16 operands / activations with f32 accumulation: loosened tolerance vs f32 ref.
    tol = 1e-3 + 2e-2 * float(jnp.max(jnp.abs(ref)))
    max_err = float(jnp.max(jnp.abs(out - ref)))
    assert max_err < tol, f"mismatch vs reference: max_err={max_err}, tol={tol}"

    print("KERNEL_OK")
</pallas_src>

<mosaic_0001>
module attributes {stable_mosaic.version = 11 : i64} {
  func.func @_matmul_bias_relu_kernel(%arg0: i32, %arg1: i32, %arg2: memref<56x1024xbf16, #tpu.memory_space<vmem>>, %arg3: memref<1024x128xbf16, #tpu.memory_space<vmem>>, %arg4: memref<1x128xf32, #tpu.memory_space<vmem>>, %arg5: memref<56x128xbf16, #tpu.memory_space<vmem>>, %arg6: memref<56x128xf32, #tpu.memory_space<vmem>>) attributes {dimension_semantics = [#tpu.dimension_semantics<parallel>, #tpu.dimension_semantics<arbitrary>], iteration_bounds = array<i64: 1, 1>, scalar_prefetch = 0 : i64, scratch_operands = 1 : i64, tpu.core_type = #tpu.core_type<tc>, window_params = [{transform_indices = @transform_0, window_bounds = array<i64: 56, 1024>}, {transform_indices = @transform_1, window_bounds = array<i64: 1024, 128>}, {pipeline_mode = #tpu.pipeline_mode<synchronous>, transform_indices = @transform_2, window_bounds = array<i64: 1, 128>}, {transform_indices = @transform_3, window_bounds = array<i64: 56, 128>}]} {
    %c0_i32 = arith.constant 0 : i32
    %0 = arith.cmpi eq, %arg1, %c0_i32 : i32
    %1 = arith.extui %0 : i1 to i32
    %c0_i32_0 = arith.constant 0 : i32
    %2 = arith.cmpi ne, %1, %c0_i32_0 : i32
    scf.if %2 {
      %cst_10 = arith.constant 0.000000e+00 : f32
      %12 = vector.broadcast %cst_10 : f32 to vector<56x128xf32>
      %c0_11 = arith.constant 0 : index
      %c0_12 = arith.constant 0 : index
      %13 = vector.load %arg6[%c0_11, %c0_12] : memref<56x128xf32, #tpu.memory_space<vmem>>, vector<56x128xf32>
      tpu.vector_store %arg6[%c0_11, %c0_12], %12 {strides = array<i32>} : memref<56x128xf32, #tpu.memory_space<vmem>>, vector<56x128xf32>,
    } else {
    }
    %c0 = arith.constant 0 : index
    %c0_1 = arith.constant 0 : index
    %3 = vector.load %arg6[%c0, %c0_1] : memref<56x128xf32, #tpu.memory_space<vmem>>, vector<56x128xf32>
    %c0_2 = arith.constant 0 : index
    %c0_3 = arith.constant 0 : index
    %4 = vector.load %arg2[%c0_2, %c0_3] : memref<56x1024xbf16, #tpu.memory_space<vmem>>, vector<56x1024xbf16>
    %c0_4 = arith.constant 0 : index
    %c0_5 = arith.constant 0 : index
    %5 = vector.load %arg3[%c0_4, %c0_5] : memref<1024x128xbf16, #tpu.memory_space<vmem>>, vector<1024x128xbf16>
    %cst = arith.constant dense<0.000000e+00> : vector<56x128xf32>
    %6 = tpu.matmul %4, %5, %cst {dimension_numbers = #tpu.dot_dimension_numbers<[1], [0], [0], [1], [0, 0, 1, 1], [], []>} : vector<56x1024xbf16>, vector<1024x128xbf16>, vector<56x128xf32> -> vector<56x128xf32>
    %7 = arith.addf %3, %6 : vector<56x128xf32>
    %c0_6 = arith.constant 0 : index
    %c0_7 = arith.constant 0 : index
    %8 = vector.load %arg6[%c0_6, %c0_7] : memref<56x128xf32, #tpu.memory_space<vmem>>, vector<56x128xf32>
    tpu.vector_store %arg6[%c0_6, %c0_7], %7 {strides = array<i32>} : memref<56x128xf32, #tpu.memory_space<vmem>>, vector<56x128xf32>,
    %c0_i32_8 = arith.constant 0 : i32
    %9 = arith.cmpi eq, %arg1, %c0_i32_8 : i32
    %10 = arith.extui %9 : i1 to i32
    %c0_i32_9 = arith.constant 0 : i32
    %11 = arith.cmpi ne, %10, %c0_i32_9 : i32
    scf.if %11 {
      %c0_10 = arith.constant 0 : index
      %c0_11 = arith.constant 0 : index
      %12 = vector.load %arg6[%c0_10, %c0_11] : memref<56x128xf32, #tpu.memory_space<vmem>>, vector<56x128xf32>
      %c0_12 = arith.constant 0 : index
      %c0_13 = arith.constant 0 : index
      %13 = vector.load %arg4[%c0_12, %c0_13] : memref<1x128xf32, #tpu.memory_space<vmem>>, vector<1x128xf32>
      %14 = vector.broadcast %13 : vector<1x128xf32> to vector<56x128xf32>
      %15 = arith.addf %12, %14 : vector<56x128xf32>
      %cst_14 = arith.constant 0.000000e+00 : f32
      %16 = vector.broadcast %cst_14 : f32 to vector<56x128xf32>
      %17 = arith.maximumf %15, %16 : vector<56x128xf32>
      %18 = arith.truncf %17 : vector<56x128xf32> to vector<56x128xbf16>
      %c0_15 = arith.constant 0 : index
      %c0_16 = arith.constant 0 : index
      %19 = vector.load %arg5[%c0_15, %c0_16] : memref<56x128xbf16, #tpu.memory_space<vmem>>, vector<56x128xbf16>
      tpu.vector_store %arg5[%c0_15, %c0_16], %18 {strides = array<i32>} : memref<56x128xbf16, #tpu.memory_space<vmem>>, vector<56x128xbf16>,
    } else {
    }
    return
  }
  func.func @transform_0(%arg0: i32, %arg1: i32) -> (i32, i32) {
    %c0_i32 = arith.constant 0 : i32
    return %arg0, %arg1 : i32, i32
  }
  func.func @transform_1(%arg0: i32, %arg1: i32) -> (i32, i32) {
    %c0_i32 = arith.constant 0 : i32
    %c0_i32_0 = arith.constant 0 : i32
    return %arg1, %c0_i32 : i32, i32
  }
  func.func @transform_2(%arg0: i32, %arg1: i32) -> (i32, i32) {
    %c0_i32 = arith.constant 0 : i32
    %c0_i32_0 = arith.constant 0 : i32
    %c0_i32_1 = arith.constant 0 : i32
    return %c0_i32, %c0_i32_0 : i32, i32
  }
  func.func @transform_3(%arg0: i32, %arg1: i32) -> (i32, i32) {
    %c0_i32 = arith.constant 0 : i32
    %c0_i32_0 = arith.constant 0 : i32
    return %arg0, %c0_i32 : i32, i32
  }
}

module attributes {stable_mosaic.version = 11 : i64} {
  func.func @_matmul_bias_relu_kernel(%arg0: i32, %arg1: i32, %arg2: memref<128x128xbf16, #tpu.memory_space<vmem>>, %arg3: memref<128x128xbf16, #tpu.memory_space<vmem>>, %arg4: memref<1x128xf32, #tpu.memory_space<vmem>>, %arg5: memref<128x128xbf16, #tpu.memory_space<vmem>>, %arg6: memref<128x128xf32, #tpu.memory_space<vmem>>) attributes {dimension_semantics = [#tpu.dimension_semantics<parallel>, #tpu.dimension_semantics<arbitrary>], iteration_bounds = array<i64: 1, 1>, scalar_prefetch = 0 : i64, scratch_operands = 1 : i64, tpu.core_type = #tpu.core_type<tc>, window_params = [{transform_indices = @transform_0, window_bounds = array<i64: 128, 128>}, {transform_indices = @transform_1, window_bounds = array<i64: 128, 128>}, {pipeline_mode = #tpu.pipeline_mode<synchronous>, transform_indices = @transform_2, window_bounds = array<i64: 1, 128>}, {transform_indices = @transform_3, window_bounds = array<i64: 128, 128>}]} {
    %c0_i32 = arith.constant 0 : i32
    %0 = arith.cmpi eq, %arg1, %c0_i32 : i32
    %1 = arith.extui %0 : i1 to i32
    %c0_i32_0 = arith.constant 0 : i32
    %2 = arith.cmpi ne, %1, %c0_i32_0 : i32
    scf.if %2 {
      %cst_10 = arith.constant 0.000000e+00 : f32
      %12 = vector.broadcast %cst_10 : f32 to vector<128x128xf32>
      %c0_11 = arith.constant 0 : index
      %c0_12 = arith.constant 0 : index
      %13 = vector.load %arg6[%c0_11, %c0_12] : memref<128x128xf32, #tpu.memory_space<vmem>>, vector<128x128xf32>
      tpu.vector_store %arg6[%c0_11, %c0_12], %12 {strides = array<i32>} : memref<128x128xf32, #tpu.memory_space<vmem>>, vector<128x128xf32>,
    } else {
    }
    %c0 = arith.constant 0 : index
    %c0_1 = arith.constant 0 : index
    %3 = vector.load %arg6[%c0, %c0_1] : memref<128x128xf32, #tpu.memory_space<vmem>>, vector<128x128xf32>
    %c0_2 = arith.constant 0 : index
    %c0_3 = arith.constant 0 : index
    %4 = vector.load %arg2[%c0_2, %c0_3] : memref<128x128xbf16, #tpu.memory_space<vmem>>, vector<128x128xbf16>
    %c0_4 = arith.constant 0 : index
    %c0_5 = arith.constant 0 : index
    %5 = vector.load %arg3[%c0_4, %c0_5] : memref<128x128xbf16, #tpu.memory_space<vmem>>, vector<128x128xbf16>
    %cst = arith.constant dense<0.000000e+00> : vector<128x128xf32>
    %6 = tpu.matmul %4, %5, %cst {dimension_numbers = #tpu.dot_dimension_numbers<[1], [0], [0], [1], [0, 0, 1, 1], [], []>} : vector<128x128xbf16>, vector<128x128xbf16>, vector<128x128xf32> -> vector<128x128xf32>
    %7 = arith.addf %3, %6 : vector<128x128xf32>
    %c0_6 = arith.constant 0 : index
    %c0_7 = arith.constant 0 : index
    %8 = vector.load %arg6[%c0_6, %c0_7] : memref<128x128xf32, #tpu.memory_space<vmem>>, vector<128x128xf32>
    tpu.vector_store %arg6[%c0_6, %c0_7], %7 {strides = array<i32>} : memref<128x128xf32, #tpu.memory_space<vmem>>, vector<128x128xf32>,
    %c0_i32_8 = arith.constant 0 : i32
    %9 = arith.cmpi eq, %arg1, %c0_i32_8 : i32
    %10 = arith.extui %9 : i1 to i32
    %c0_i32_9 = arith.constant 0 : i32
    %11 = arith.cmpi ne, %10, %c0_i32_9 : i32
    scf.if %11 {
      %c0_10 = arith.constant 0 : index
      %c0_11 = arith.constant 0 : index
      %12 = vector.load %arg6[%c0_10, %c0_11] : memref<128x128xf32, #tpu.memory_space<vmem>>, vector<128x128xf32>
      %c0_12 = arith.constant 0 : index
      %c0_13 = arith.constant 0 : index
      %13 = vector.load %arg4[%c0_12, %c0_13] : memref<1x128xf32, #tpu.memory_space<vmem>>, vector<1x128xf32>
      %14 = vector.broadcast %13 : vector<1x128xf32> to vector<128x128xf32>
      %15 = arith.addf %12, %14 : vector<128x128xf32>
      %cst_14 = arith.constant 0.000000e+00 : f32
      %16 = vector.broadcast %cst_14 : f32 to vector<128x128xf32>
      %17 = arith.maximumf %15, %16 : vector<128x128xf32>
      %18 = arith.truncf %17 : vector<128x128xf32> to vector<128x128xbf16>
      %c0_15 = arith.constant 0 : index
      %c0_16 = arith.constant 0 : index
      %19 = vector.load %arg5[%c0_15, %c0_16] : memref<128x128xbf16, #tpu.memory_space<vmem>>, vector<128x128xbf16>
      tpu.vector_store %arg5[%c0_15, %c0_16], %18 {strides = array<i32>} : memref<128x128xbf16, #tpu.memory_space<vmem>>, vector<128x128xbf16>,
    } else {
    }
    return
  }
  func.func @transform_0(%arg0: i32, %arg1: i32) -> (i32, i32) {
    %c0_i32 = arith.constant 0 : i32
    return %arg0, %arg1 : i32, i32
  }
  func.func @transform_1(%arg0: i32, %arg1: i32) -> (i32, i32) {
    %c0_i32 = arith.constant 0 : i32
    %c0_i32_0 = arith.constant 0 : i32
    return %arg1, %c0_i32 : i32, i32
  }
  func.func @transform_2(%arg0: i32, %arg1: i32) -> (i32, i32) {
    %c0_i32 = arith.constant 0 : i32
    %c0_i32_0 = arith.constant 0 : i32
    %c0_i32_1 = arith.constant 0 : i32
    return %c0_i32, %c0_i32_0 : i32, i32
  }
  func.func @transform_3(%arg0: i32, %arg1: i32) -> (i32, i32) {
    %c0_i32 = arith.constant 0 : i32
    %c0_i32_0 = arith.constant 0 : i32
    return %arg0, %c0_i32 : i32, i32
  }
}

</mosaic_0001>

<bundles_post_ra>
// kernel: _lambda_.2
= control target key start
LH: loop header
LB: loop body
LE: loop exit
PB: predicated region body
PF: predicated region fallthrough
CT: control target
= control target key end

     0   :  { %s1754_s1 = inlined_call_operand.vmem [shape: bf16[1024,128], index: 1, kind: input, shape index: {}]   ;;  %s1755_s0 = inlined_call_operand.vmem [shape: bf16[56,1024], index: 0, kind: input, shape index: {}]   ;;  %s1756_s2 = inlined_call_operand.vmem [shape: f32[1,128], index: 2, kind: input, shape index: {}]   ;;  %s1757_s3 = inlined_call_operand.vmem [shape: bf16[56,128], index: 3, kind: output, shape index: {}]  }
   0x1   :  { %v1350_v0 = vld [vmem:[%s1754_s1 + $0x40] sm:$0xff]   ;;  %v1354_v4 = vld [vmem:[%s1754_s1 + $0x48] sm:$0xff]   ;;  %v1358_v8 = vld [vmem:[%s1754_s1 + $0x50] sm:$0xff]  }
   0x2   :  { %v1351_v1 = vld [vmem:[%s1754_s1 + $0xc0] sm:$0xff]   ;;  %1190 = vmatprep.subr.bf16.mxu0 %v1350_v0  ;;  %v1355_v5 = vld [vmem:[%s1754_s1 + $0xc8] sm:$0xff]   ;;  %v1359_v9 = vld [vmem:[%s1754_s1 + $0xd0] sm:$0xff]  }
   0x3   :  { %v1352_v2 = vld [vmem:[%s1754_s1] sm:$0xff]   ;;  %1230 = vmatprep.subr.bf16.mxu1 %v1351_v1  ;;  %v1356_v6 = vld [vmem:[%s1754_s1 + $0x8] sm:$0xff]   ;;  %v1360_v10 = vld [vmem:[%s1754_s1 + $0x10] sm:$0xff]  }
   0x4   :  { %v1353_v3 = vld [vmem:[%s1754_s1 + $0x80] sm:$0xff]   ;;  %1191 = vmatpush3.bf16.msra.mxu0 %v1352_v2  ;;  %v1357_v7 = vld [vmem:[%s1754_s1 + $0x88] sm:$0xff]   ;;  %v1361_v11 = vld [vmem:[%s1754_s1 + $0x90] sm:$0xff]  }
   0x5   :  { %1231 = vmatpush3.bf16.msra.mxu1 %v1353_v3  ;;  %1192 = vmatprep.subr.bf16.mxu0 %v1354_v4  ;;  %v1362_v12 = vld [vmem:[%s1754_s1 + $0x58] sm:$0xff]   ;;  %v1366_v16 = vld [vmem:[%s1754_s1 + $0x60] sm:$0xff]   ;;  %v1370_v20 = vld [vmem:[%s1754_s1 + $0x68] sm:$0xff]  }
   0x6   :  { %1232 = vmatprep.subr.bf16.mxu1 %v1355_v5  ;;  %v1363_v13 = vld [vmem:[%s1754_s1 + $0xd8] sm:$0xff]   ;;  %v1367_v17 = vld [vmem:[%s1754_s1 + $0xe0] sm:$0xff]   ;;  %v1371_v21 = vld [vmem:[%s1754_s1 + $0xe8] sm:$0xff]  }
   0x7   :  { %v1364_v14 = vld [vmem:[%s1754_s1 + $0x18] sm:$0xff]   ;;  %v1368_v18 = vld [vmem:[%s1754_s1 + $0x20] sm:$0xff]   ;;  %v1372_v22 = vld [vmem:[%s1754_s1 + $0x28] sm:$0xff]  }
   0x8   :  { %1193 = vmatpush3.bf16.msra.mxu0 %v1356_v6  ;;  %v1365_v15 = vld [vmem:[%s1754_s1 + $0x98] sm:$0xff]   ;;  %v1369_v19 = vld [vmem:[%s1754_s1 + $0xa0] sm:$0xff]   ;;  %v1373_v23 = vld [vmem:[%s1754_s1 + $0xa8] sm:$0xff]  }
   0x9   :  { %1233 = vmatpush3.bf16.msra.mxu1 %v1357_v7  ;;  %1194 = vmatprep.subr.bf16.mxu0 %v1358_v8  ;;  %v1374_v24 = vld [vmem:[%s1754_s1 + $0x70] sm:$0xff]   ;;  %v1378_v28 = vld [vmem:[%s1754_s1 + $0x78] sm:$0xff]   ;;  %v33_v32 = vld [vmem:[%s1755_s0] sm:$0xff] }
   0xa   :  { %1234 = vmatprep.subr.bf16.mxu1 %v1359_v9  ;;  %v1375_v25 = vld [vmem:[%s1754_s1 + $0xf0] sm:$0xff]   ;;  %v1379_v29 = vld [vmem:[%s1754_s1 + $0xf8] sm:$0xff]   ;;  %v37_v33 = vld [vmem:[%s1755_s0 + $0x20] sm:$0xff] }
   0xb   :  { %v1376_v26 = vld [vmem:[%s1754_s1 + $0x30] sm:$0xff]   ;;  %v1380_v30 = vld [vmem:[%s1754_s1 + $0x38] sm:$0xff]   ;;  %v34_v34 = vld [vmem:[%s1755_s0 + $0x8] sm:$0xff]  ;;  %v1062_v35 = vcombine.low %v33_v32, %v37_v33  ;;  %v1063_v36 = vcombine.high %v33_v32, %v37_v33 }
   0xc   :  { %1195 = vmatpush3.bf16.msra.mxu0 %v1360_v10  ;;  %v1377_v27 = vld [vmem:[%s1754_s1 + $0xb0] sm:$0xff]   ;;  %v1381_v31 = vld [vmem:[%s1754_s1 + $0xb8] sm:$0xff]   ;;  %v38_v37 = vld [vmem:[%s1755_s0 + $0x28] sm:$0xff] }
   0xd   :  { %1235 = vmatpush3.bf16.msra.mxu1 %v1361_v11  ;;  %1196 = vmatprep.subr.bf16.mxu0 %v1362_v12  ;;  %v1064_v38 = vcombine.low %v34_v34, %v38_v37  ;;  %v1065_v39 = vcombine.high %v34_v34, %v38_v37  ;;  %v1382_v40 = vld [vmem:[%s1754_s1 + $0x140] sm:$0xff]   ;;  %v1386_v44 = vld [vmem:[%s1754_s1 + $0x148] sm:$0xff]   ;;  %v1390_v56 = vld [vmem:[%s1754_s1 + $0x150] sm:$0xff]  }
   0xe   :  { %1236 = vmatprep.subr.bf16.mxu1 %v1363_v13  ;;  %753 = vmatprep.mubr.bf16.mxu0 %v1063_v36  ;;  %v1383_v41 = vld [vmem:[%s1754_s1 + $0x1c0] sm:$0xff]   ;;  %v1387_v45 = vld [vmem:[%s1754_s1 + $0x1c8] sm:$0xff]   ;;  %v1391_v57 = vld [vmem:[%s1754_s1 + $0x1d0] sm:$0xff]  }
   0xf   :  { %817 = vmatprep.mubr.bf16.mxu1 %v1065_v39  ;;  %v1384_v42 = vld [vmem:[%s1754_s1 + $0x100] sm:$0xff]   ;;  %v1388_v46 = vld [vmem:[%s1754_s1 + $0x108] sm:$0xff]   ;;  %v1392_v58 = vld [vmem:[%s1754_s1 + $0x110] sm:$0xff]  }
  0x10   :  { %1197 = vmatpush3.bf16.msra.mxu0 %v1364_v14  ;;  %v1385_v43 = vld [vmem:[%s1754_s1 + $0x180] sm:$0xff]   ;;  %v1389_v47 = vld [vmem:[%s1754_s1 + $0x188] sm:$0xff]   ;;  %v1393_v59 = vld [vmem:[%s1754_s1 + $0x190] sm:$0xff]  }
  0x11   :  { %1237 = vmatpush3.bf16.msra.mxu1 %v1365_v15  ;;  %1198 = vmatprep.subr.bf16.mxu0 %v1366_v16  ;;  %v41_v48 = vld [vmem:[%s1755_s0 + $0x40] sm:$0xff]  ;;  %v42_v51 = vld [vmem:[%s1755_s0 + $0x48] sm:$0xff]  ;;  %v1394_v60 = vld [vmem:[%s1754_s1 + $0x158] sm:$0xff]  }
  0x12   :  { %1238 = vmatprep.subr.bf16.mxu1 %v1367_v17  ;;  %v45_v49 = vld [vmem:[%s1755_s0 + $0x60] sm:$0xff]  ;;  %v46_v52 = vld [vmem:[%s1755_s0 + $0x68] sm:$0xff]  ;;  %v1395_v61 = vld [vmem:[%s1754_s1 + $0x1d8] sm:$0xff]  }
  0x13   :  { %v1071_v50 = vcombine.high %v41_v48, %v45_v49  ;;  %v1070_v53 = vcombine.low %v41_v48, %v45_v49  ;;  %v1073_v54 = vcombine.high %v42_v51, %v46_v52  ;;  %v1072_v55 = vcombine.low %v42_v51, %v46_v52  ;;  %v1396_v62 = vld [vmem:[%s1754_s1 + $0x118] sm:$0xff]   ;;  %v49_v0 = vld [vmem:[%s1755_s0 + $0x80] sm:$0xff]  ;;  %v50_v2 = vld [vmem:[%s1755_s0 + $0x88] sm:$0xff] }
  0x14   :  { %1199 = vmatpush3.bf16.msra.mxu0 %v1368_v18  ;;  %v1397_v63 = vld [vmem:[%s1754_s1 + $0x198] sm:$0xff]   ;;  %v53_v1 = vld [vmem:[%s1755_s0 + $0xa0] sm:$0xff]  ;;  %v54_v3 = vld [vmem:[%s1755_s0 + $0xa8] sm:$0xff] }
  0x15   :  { %1239 = vmatpush3.bf16.msra.mxu1 %v1369_v19  ;;  %1200 = vmatprep.subr.bf16.mxu0 %v1370_v20  ;;  %v1079_v4 = vcombine.high %v49_v0, %v53_v1  ;;  %v1081_v5 = vcombine.high %v50_v2, %v54_v3  ;;  %v1078_v6 = vcombine.low %v49_v0, %v53_v1  ;;  %v1398_v8 = vld [vmem:[%s1754_s1 + $0x160] sm:$0xff]   ;;  %v1402_v12 = vld [vmem:[%s1754_s1 + $0x168] sm:$0xff]   ;;  %v36_v32 = vld [vmem:[%s1755_s0 + $0x18] sm:$0xff] }
  0x16   :  { %1240 = vmatprep.subr.bf16.mxu1 %v1371_v21  ;;  %v1080_v7 = vcombine.low %v50_v2, %v54_v3  ;;  %v1399_v9 = vld [vmem:[%s1754_s1 + $0x1e0] sm:$0xff]   ;;  %v1403_v13 = vld [vmem:[%s1754_s1 + $0x1e8] sm:$0xff]   ;;  %v1410_v21 = vld [vmem:[%s1754_s1 + $0x170] sm:$0xff]  }
  0x17   :  { %v1400_v10 = vld [vmem:[%s1754_s1 + $0x120] sm:$0xff]   ;;  %v1404_v14 = vld [vmem:[%s1754_s1 + $0x128] sm:$0xff]   ;;  %v40_v33 = vld [vmem:[%s1755_s0 + $0x38] sm:$0xff] }
  0x18   :  { %1201 = vmatpush3.bf16.msra.mxu0 %v1372_v22  ;;  %v1401_v11 = vld [vmem:[%s1754_s1 + $0x1a0] sm:$0xff]   ;;  %v1405_v15 = vld [vmem:[%s1754_s1 + $0x1a8] sm:$0xff]   ;;  %v1068_v36 = vcombine.low %v36_v32, %v40_v33  ;;  %v43_v37 = vld [vmem:[%s1755_s0 + $0x50] sm:$0xff] }
  0x19   :  { %1241 = vmatpush3.bf16.msra.mxu1 %v1373_v23  ;;  %1202 = vmatprep.subr.bf16.mxu0 %v1374_v24  ;;  %v57_v16 = vld [vmem:[%s1755_s0 + $0xc0] sm:$0xff]  ;;  %v58_v17 = vld [vmem:[%s1755_s0 + $0xc8] sm:$0xff]  ;;  %v1411_v23 = vld [vmem:[%s1754_s1 + $0x1f0] sm:$0xff]  }
  0x1a   :  { %1242 = vmatprep.subr.bf16.mxu1 %v1375_v25  ;;  %v1087_v18 = vcombine.high %v57_v16, %v57_v16  ;;  %v1089_v19 = vcombine.high %v58_v17, %v58_v17  ;;  %v1086_v20 = vcombine.low %v57_v16, %v57_v16  ;;  %v1088_v22 = vcombine.low %v58_v17, %v58_v17  ;;  %v1412_v24 = vld [vmem:[%s1754_s1 + $0x130] sm:$0xff]   ;;  %v44_v39 = vld [vmem:[%s1755_s0 + $0x58] sm:$0xff] }
  0x1b   :  { %v1413_v25 = vld [vmem:[%s1754_s1 + $0x1b0] sm:$0xff]  }
  0x1c   :  { %1203 = vmatpush3.bf16.msra.mxu0 %v1376_v26  ;;  %v1414_v26 = vld [vmem:[%s1754_s1 + $0x178] sm:$0xff]   ;;  %v59_v52 = vld [vmem:[%s1755_s0 + $0xd0] sm:$0xff] }
  0x1d   :  { %1243 = vmatpush3.bf16.msra.mxu1 %v1377_v27  ;;  %1204 = vmatprep.subr.bf16.mxu0 %v1378_v28  ;;  %v1415_v27 = vld [vmem:[%s1754_s1 + $0x1f8] sm:$0xff]  }
  0x1e   :  { %1244 = vmatprep.subr.bf16.mxu1 %v1379_v29  ;;  %v1416_v28 = vld [vmem:[%s1754_s1 + $0x138] sm:$0xff]  }
  0x1f   :  { %v1417_v29 = vld [vmem:[%s1754_s1 + $0x1b8] sm:$0xff]  }
  0x20   :  { %1205 = vmatpush3.bf16.msra.mxu0 %v1380_v30  ;;  %v35_v30 = vld [vmem:[%s1755_s0 + $0x10] sm:$0xff] }
  0x21   :  { %1245 = vmatpush3.bf16.msra.mxu1 %v1381_v31  ;;  %1270 = vmatprep.subr.bf16.mxu0 %v1382_v40  ;;  %v39_v31 = vld [vmem:[%s1755_s0 + $0x30] sm:$0xff]  ;;  %v1069_v40 = vcombine.high %v36_v32, %v40_v33 }
  0x22   :  { %1310 = vmatprep.subr.bf16.mxu1 %v1383_v41  ;;  %v1066_v34 = vcombine.low %v35_v30, %v39_v31 }
  0x23   :  { %754 = vmatmul.mubr.bf16.vlgmr.msra.gmra.mrb[0].mxu0 %v1062_v35  ;;  %v1067_v35 = vcombine.high %v35_v30, %v39_v31 }
  0x24   :  { %818 = vmatmul.mubr.bf16.vlgmr.msra.gmra.mrb[0].mxu1 %v1064_v38  ;;  %1271 = vmatpush3.bf16.msra.mxu0 %v1384_v42  ;;  %v47_v38 = vld [vmem:[%s1755_s0 + $0x70] sm:$0xff]  ;;  %v48_v42 = vld [vmem:[%s1755_s0 + $0x78] sm:$0xff] }
  0x25   :  { %1311 = vmatpush3.bf16.msra.mxu1 %v1385_v43  ;;  %1272 = vmatprep.subr.bf16.mxu0 %v1386_v44  ;;  %v1075_v41 = vcombine.high %v43_v37, %v47_v38  ;;  %v1077_v43 = vcombine.high %v44_v39, %v48_v42  ;;  %v51_v44 = vld [vmem:[%s1755_s0 + $0x90] sm:$0xff]  ;;  %v1074_v48 = vcombine.low %v43_v37, %v47_v38 }
  0x26   :  { %1312 = vmatprep.subr.bf16.mxu1 %v1387_v45  ;;  %761 = vmatprep.mubr.bf16.mxu0 %v1071_v50  ;;  %v55_v45 = vld [vmem:[%s1755_s0 + $0xb0] sm:$0xff]  ;;  %v1076_v49 = vcombine.low %v44_v39, %v48_v42 }
  0x27   :  { %825 = vmatprep.mubr.bf16.mxu1 %v1073_v54  ;;  %v1083_v50 = vcombine.high %v51_v44, %v55_v45  ;;  %v1082_v54 = vcombine.low %v51_v44, %v55_v45 }
  0x28   :  { %1273 = vmatpush3.bf16.msra.mxu0 %v1388_v46  ;;  %v52_v46 = vld [vmem:[%s1755_s0 + $0x98] sm:$0xff] }
  0x29   :  { %1313 = vmatpush3.bf16.msra.mxu1 %v1389_v47  ;;  %1274 = vmatprep.subr.bf16.mxu0 %v1390_v56  ;;  %v56_v47 = vld [vmem:[%s1755_s0 + $0xb8] sm:$0xff]  ;;  %v1091_v56 = vcombine.high %v59_v52, %v59_v52 }
  0x2a   :  { %1314 = vmatprep.subr.bf16.mxu1 %v1391_v57  ;;  %v1085_v51 = vcombine.high %v52_v46, %v56_v47 }
  0x2b   :  { %762 = vmatmul.mubr.bf16.gmra.mrb[4].mxu0 %v1070_v53  ;;  %v60_v53 = vld [vmem:[%s1755_s0 + $0xd8] sm:$0xff] }
  0x2c   :  { %826 = vmatmul.mubr.bf16.gmra.mrb[4].mxu1 %v1072_v55  ;;  %1275 = vmatpush3.bf16.msra.mxu0 %v1392_v58  ;;  %v1084_v55 = vcombine.low %v52_v46, %v56_v47  ;;  %v1093_v57 = vcombine.high %v60_v53, %v60_v53  ;;  %v1090_v58 = vcombine.low %v59_v52, %v59_v52 }
  0x2d   :  { %1315 = vmatpush3.bf16.msra.mxu1 %v1393_v59  ;;  %1276 = vmatprep.subr.bf16.mxu0 %v1394_v60  ;;  %v1092_v59 = vcombine.low %v60_v53, %v60_v53 }
  0x2e   :  { %1316 = vmatprep.subr.bf16.mxu1 %v1395_v61  ;;  %769 = vmatprep.mubr.bf16.mxu0 %v1079_v4 }
  0x2f   :  { %833 = vmatprep.mubr.bf16.mxu1 %v1081_v5 }
  0x30   :  { %1277 = vmatpush3.bf16.msra.mxu0 %v1396_v62 }
  0x31   :  { %1317 = vmatpush3.bf16.msra.mxu1 %v1397_v63  ;;  %1278 = vmatprep.subr.bf16.mxu0 %v1398_v8 }
  0x32   :  { %1318 = vmatprep.subr.bf16.mxu1 %v1399_v9 }
  0x33   :  { %770 = vmatmul.mubr.bf16.gmra.mrb[8].mxu0 %v1078_v6 }
  0x34   :  { %834 = vmatmul.mubr.bf16.gmra.mrb[8].mxu1 %v1080_v7  ;;  %1279 = vmatpush3.bf16.msra.mxu0 %v1400_v10 }
  0x35   :  { %1319 = vmatpush3.bf16.msra.mxu1 %v1401_v11  ;;  %1280 = vmatprep.subr.bf16.mxu0 %v1402_v12 }
  0x36   :  { %1320 = vmatprep.subr.bf16.mxu1 %v1403_v13  ;;  %777 = vmatprep.mubr.bf16.mxu0 %v1087_v18 }
  0x37   :  { %841 = vmatprep.mubr.bf16.mxu1 %v1089_v19 }
  0x38   :  { %1281 = vmatpush3.bf16.msra.mxu0 %v1404_v14 }
  0x39   :  { %1321 = vmatpush3.bf16.msra.mxu1 %v1405_v15  ;;  %1282 = vmatprep.subr.bf16.mxu0 %v1410_v21 }
  0x3a   :  { %1322 = vmatprep.subr.bf16.mxu1 %v1411_v23 }
  0x3b   :  { %778 = vmatmul.mubr.bf16.gmra.mrb[12].mxu0 %v1086_v20 }
  0x3c   :  { %842 = vmatmul.mubr.bf16.gmra.mrb[12].mxu1 %v1088_v22  ;;  %1283 = vmatpush3.bf16.msra.mxu0 %v1412_v24 }
  0x3d   :  { %1323 = vmatpush3.bf16.msra.mxu1 %v1413_v25  ;;  %1284 = vmatprep.subr.bf16.mxu0 %v1414_v26 }
  0x3e   :  { %1324 = vmatprep.subr.bf16.mxu1 %v1415_v27  ;;  %881 = vmatprep.mubr.bf16.mxu0 %v1067_v35 }
  0x3f   :  { %945 = vmatprep.mubr.bf16.mxu1 %v1069_v40 }
  0x40   :  { %1285 = vmatpush3.bf16.msra.mxu0 %v1416_v28 }
  0x41   :  { %1325 = vmatpush3.bf16.msra.mxu1 %v1417_v29 }
  0x43   :  { %882 = vmatmul.mubr.bf16.vlgmr.msra.gmra.mrb[16].mxu0 %v1066_v34 }
  0x44   :  { %946 = vmatmul.mubr.bf16.vlgmr.msra.gmra.mrb[16].mxu1 %v1068_v36  ;;  %889 = vmatprep.mubr.bf16.mxu0 %v1075_v41 }
  0x45   :  { %953 = vmatprep.mubr.bf16.mxu1 %v1077_v43 }
  0x4b   :  { %890 = vmatmul.mubr.bf16.gmra.mrb[20].mxu0 %v1074_v48 }
  0x4c   :  { %954 = vmatmul.mubr.bf16.gmra.mrb[20].mxu1 %v1076_v49  ;;  %897 = vmatprep.mubr.bf16.mxu0 %v1083_v50 }
  0x4d   :  { %961 = vmatprep.mubr.bf16.mxu1 %v1085_v51 }
  0x53   :  { %898 = vmatmul.mubr.bf16.gmra.mrb[24].mxu0 %v1082_v54 }
  0x54   :  { %962 = vmatmul.mubr.bf16.gmra.mrb[24].mxu1 %v1084_v55  ;;  %905 = vmatprep.mubr.bf16.mxu0 %v1091_v56 }
  0x55   :  { %969 = vmatprep.mubr.bf16.mxu1 %v1093_v57 }
  0x5b   :  { %906 = vmatmul.mubr.bf16.gmra.mrb[28].mxu0 %v1090_v58 }
  0x5c   :  { %970 = vmatmul.mubr.bf16.gmra.mrb[28].mxu1 %v1092_v59 }
  0xf6   :  { %v1206_v60 = vpop.f32.mrb[0].mxu0 }
  0xf7   :  { %v1246_v61 = vpop.f32.mrb[0].mxu1  ;;  %v1207_v62 = vpop.f32.mrb[1].mxu0 }
  0xf8   :  { %v1208_v63 = vadd.f32 %v1207_v62, %v1206_v60  ;;  %v1247_v0 = vpop.f32.mrb[1].mxu1  ;;  %v1209_v1 = vpop.f32.mrb[2].mxu0 }
  0xf9   :  { %v1248_v2 = vadd.f32 %v1247_v0, %v1246_v61  ;;  %v1249_v3 = vpop.f32.mrb[2].mxu1  ;;  %v1210_v4 = vpop.f32.mrb[3].mxu0  ;;  %v1729_v61 = vld [vmem:[%s1756_s2] ss:$0 sm:$0xff] }
  0xfa   :  { %v1211_v5 = vadd.f32 %v1210_v4, %v1209_v1  ;;  %v1250_v6 = vpop.f32.mrb[3].mxu1 }
  0xfb   :  { %v820_v7 = vadd.f32 %v1248_v2, %v1208_v63  ;;  %v1251_v8 = vadd.f32 %v1250_v6, %v1249_v3 }
  0xfd   :  { %v823_v9 = vadd.f32 %v1251_v8, %v1211_v5 }
  0xfe   :  { %v1212_v10 = vpop.f32.mrb[4].mxu0 }
  0xff   :  { %v1252_v11 = vpop.f32.mrb[4].mxu1  ;;  %v1213_v12 = vpop.f32.mrb[5].mxu0 }
 0x100   :  { %v1214_v13 = vadd.f32 %v1213_v12, %v1212_v10  ;;  %v1253_v14 = vpop.f32.mrb[5].mxu1  ;;  %v1215_v15 = vpop.f32.mrb[6].mxu0 }
 0x101   :  { %v1254_v16 = vadd.f32 %v1253_v14, %v1252_v11  ;;  %v1255_v17 = vpop.f32.mrb[6].mxu1  ;;  %v1216_v18 = vpop.f32.mrb[7].mxu0 }
 0x102   :  { %v1217_v19 = vadd.f32 %v1216_v18, %v1215_v15  ;;  %v1256_v20 = vpop.f32.mrb[7].mxu1 }
 0x103   :  { %v828_v21 = vadd.f32 %v1254_v16, %v1214_v13  ;;  %v1257_v22 = vadd.f32 %v1256_v20, %v1255_v17 }
 0x105   :  { %v1718_v23 = vadd.f32 %v1257_v22, %v1217_v19 }
 0x106   :  { %v1218_v24 = vpop.f32.mrb[8].mxu0 }
 0x107   :  { %v1258_v25 = vpop.f32.mrb[8].mxu1  ;;  %v1219_v26 = vpop.f32.mrb[9].mxu0 }
 0x108   :  { %v1259_v27 = vpop.f32.mrb[9].mxu1  ;;  %v1220_v28 = vadd.f32 %v1219_v26, %v1218_v24  ;;  %v1221_v30 = vpop.f32.mrb[10].mxu0 }
 0x109   :  { %v1260_v29 = vadd.f32 %v1259_v27, %v1258_v25  ;;  %v1261_v31 = vpop.f32.mrb[10].mxu1  ;;  %v1222_v32 = vpop.f32.mrb[11].mxu0 }
 0x10a   :  { %v1262_v33 = vpop.f32.mrb[11].mxu1  ;;  %v1223_v35 = vadd.f32 %v1222_v32, %v1221_v30 }
 0x10b   :  { %v1720_v34 = vadd.f32 %v1260_v29, %v1220_v28  ;;  %v1263_v36 = vadd.f32 %v1262_v33, %v1261_v31 }
 0x10d   :  { %v1722_v37 = vadd.f32 %v1263_v36, %v1223_v35 }
 0x10e   :  { %v1224_v38 = vpop.f32.mrb[12].mxu0 }
 0x10f   :  { %v1264_v39 = vpop.f32.mrb[12].mxu1  ;;  %v1225_v40 = vpop.f32.mrb[13].mxu0 }
 0x110   :  { %v1265_v41 = vpop.f32.mrb[13].mxu1  ;;  %v1226_v42 = vadd.f32 %v1225_v40, %v1224_v38  ;;  %v1227_v44 = vpop.f32.mrb[14].mxu0 }
 0x111   :  { %v1266_v43 = vadd.f32 %v1265_v41, %v1264_v39  ;;  %v1267_v45 = vpop.f32.mrb[14].mxu1  ;;  %v1228_v46 = vpop.f32.mrb[15].mxu0 }
 0x112   :  { %v1268_v47 = vpop.f32.mrb[15].mxu1 }
 0x113   :  { %v1724_v48 = vadd.f32 %v1266_v43, %v1226_v42 }
 0x116   :  { %v1286_v49 = vpop.f32.mrb[16].mxu0 }
 0x117   :  { %v1326_v50 = vpop.f32.mrb[16].mxu1  ;;  %v1287_v51 = vpop.f32.mrb[17].mxu0 }
 0x118   :  { %v1288_v52 = vadd.f32 %v1287_v51, %v1286_v49  ;;  %v1327_v53 = vpop.f32.mrb[17].mxu1  ;;  %v1289_v54 = vpop.f32.mrb[18].mxu0 }
 0x119   :  { %v1328_v55 = vadd.f32 %v1327_v53, %v1326_v50  ;;  %v1329_v56 = vpop.f32.mrb[18].mxu1  ;;  %v1290_v57 = vpop.f32.mrb[19].mxu0 }
 0x11a   :  { %v884_v58 = vadd.f32 %v1288_v52, %v820_v7  ;;  %v1291_v59 = vadd.f32 %v1290_v57, %v1289_v54  ;;  %v1330_v60 = vpop.f32.mrb[19].mxu1 }
 0x11b   :  { %v1331_v62 = vadd.f32 %v1330_v60, %v1329_v56 }
 0x11c   :  { %v948_v63 = vadd.f32 %v1328_v55, %v884_v58  ;;  %v887_v0 = vadd.f32 %v1291_v59, %v823_v9 }
 0x11e   :  { %v1008_v1 = vadd.f32 %v1729_v61, %v948_v63  ;;  %v951_v2 = vadd.f32 %v1331_v62, %v887_v0  ;;  %v1292_v3 = vpop.f32.mrb[20].mxu0 }
 0x11f   :  { %v1332_v4 = vpop.f32.mrb[20].mxu1  ;;  %v1293_v5 = vpop.f32.mrb[21].mxu0 }
 0x120   :  { %v1009_v6 = vadd.f32 %v1729_v61, %v951_v2  ;;  %v1294_v8 = vadd.f32 %v1293_v5, %v1292_v3  ;;  %v1333_v7 = vpop.f32.mrb[21].mxu1  ;;  %v1295_v10 = vpop.f32.mrb[22].mxu0  ;;  %v1015_v14 = vmax.f32 %v1008_v1, 0.0 }
 0x121   :  { %v1334_v11 = vadd.f32 %v1333_v7, %v1332_v4  ;;  %v1335_v12 = vpop.f32.mrb[22].mxu1  ;;  %v1296_v13 = vpop.f32.mrb[23].mxu0 }
 0x122   :  { %v1016_v15 = vmax.f32 %v1009_v6, 0.0  ;;  %v892_v16 = vadd.f32 %v1294_v8, %v828_v21  ;;  %v1297_v17 = vadd.f32 %v1296_v13, %v1295_v10  ;;  %v1336_v18 = vpop.f32.mrb[23].mxu1 }
 0x123   :  { %v1337_v9 = vadd.f32 %v1336_v18, %v1335_v12 }
 0x124   :  { %v1176_v19 = vpack.c.bf16 %v1016_v15, %v1015_v14  ;;  %v956_v20 = vadd.f32 %v1334_v11, %v892_v16  ;;  %v895_v22 = vadd.f32 %v1297_v17, %v1718_v23 }
 0x126   :  { %1177 = vst [vmem:[%s1757_s3] sm:$0xff] %v1176_v19   ;;  %v1010_v24 = vadd.f32 %v1729_v61, %v956_v20  ;;  %v959_v25 = vadd.f32 %v1337_v9, %v895_v22  ;;  %v1298_v26 = vpop.f32.mrb[24].mxu0 }
 0x127   :  { %v1338_v27 = vpop.f32.mrb[24].mxu1  ;;  %v1299_v28 = vpop.f32.mrb[25].mxu0 }
 0x128   :  { %v1011_v29 = vadd.f32 %v1729_v61, %v959_v25  ;;  %v1300_v21 = vadd.f32 %v1299_v28, %v1298_v26  ;;  %v1339_v30 = vpop.f32.mrb[25].mxu1  ;;  %v1301_v31 = vpop.f32.mrb[26].mxu0  ;;  %v1017_v36 = vmax.f32 %v1010_v24, 0.0 }
 0x129   :  { %v1340_v32 = vadd.f32 %v1339_v30, %v1338_v27  ;;  %v1341_v33 = vpop.f32.mrb[26].mxu1  ;;  %v1302_v35 = vpop.f32.mrb[27].mxu0 }
 0x12a   :  { %v1018_v23 = vmax.f32 %v1011_v29, 0.0  ;;  %v900_v38 = vadd.f32 %v1300_v21, %v1720_v34  ;;  %v1303_v39 = vadd.f32 %v1302_v35, %v1301_v31  ;;  %v1342_v40 = vpop.f32.mrb[27].mxu1 }
 0x12b   :  { %v1343_v41 = vadd.f32 %v1342_v40, %v1341_v33 }
 0x12c   :  { %v1181_v42 = vpack.c.bf16 %v1018_v23, %v1017_v36  ;;  %v964_v43 = vadd.f32 %v1340_v32, %v900_v38  ;;  %v903_v44 = vadd.f32 %v1303_v39, %v1722_v37 }
 0x12e   :  { %1188 = vst [vmem:[%s1757_s3 + $0x8] sm:$0xff] %v1181_v42   ;;  %v1012_v45 = vadd.f32 %v1729_v61, %v964_v43  ;;  %v967_v46 = vadd.f32 %v1343_v41, %v903_v44  ;;  %v1304_v47 = vpop.f32.mrb[28].mxu0 }
 0x12f   :  { %v1344_v49 = vpop.f32.mrb[28].mxu1  ;;  %v1305_v50 = vpop.f32.mrb[29].mxu0 }
 0x130   :  { %v1013_v51 = vadd.f32 %v1729_v61, %v967_v46  ;;  %v1306_v34 = vadd.f32 %v1305_v50, %v1304_v47  ;;  %v1345_v52 = vpop.f32.mrb[29].mxu1  ;;  %v1307_v53 = vpop.f32.mrb[30].mxu0  ;;  %v1019_v57 = vmax.f32 %v1012_v45, 0.0 }
 0x131   :  { %v1346_v54 = vadd.f32 %v1345_v52, %v1344_v49  ;;  %v1347_v55 = vpop.f32.mrb[30].mxu1  ;;  %v1308_v56 = vpop.f32.mrb[31].mxu0 }
 0x132   :  { %v1020_v37 = vmax.f32 %v1013_v51, 0.0  ;;  %v908_v58 = vadd.f32 %v1306_v34, %v1724_v48  ;;  %v1348_v59 = vpop.f32.mrb[31].mxu1 }
 0x134   :  { %v1186_v60 = vpack.c.bf16 %v1020_v37, %v1019_v57  ;;  %v972_v62 = vadd.f32 %v1346_v54, %v908_v58 }
 0x136   :  { %1189 = vst [vmem:[%s1757_s3 + $0x10] sm:$0xff] %v1186_v60   ;;  %v1014_v63 = vadd.f32 %v1729_v61, %v972_v62 }
 0x138   :  { %v1021_v0 = vmax.f32 %v1014_v63, 0.0 }
 0x13a   :  { %v1172_v1 = vpack.c.bf16 %v1021_v0, %v1021_v0 }
 0x13c   :  { %1057 = vst [vmem:[%s1757_s3 + $0x18] sm:$0xf] %v1172_v1 }

// kernel: _lambda_.3
= control target key start
LH: loop header
LB: loop body
LE: loop exit
PB: predicated region body
PF: predicated region fallthrough
CT: control target
= control target key end

     0   :  { %s721_s1 = inlined_call_operand.vmem [shape: bf16[128,128], index: 1, kind: input, shape index: {}]   ;;  %s722_s0 = inlined_call_operand.vmem [shape: bf16[128,128], index: 0, kind: input, shape index: {}]   ;;  %s723_s2 = inlined_call_operand.vmem [shape: f32[1,128], index: 2, kind: input, shape index: {}]   ;;  %s724_s3 = inlined_call_operand.vmem [shape: bf16[128,128], index: 3, kind: output, shape index: {}]  }
   0x1   :  { %v610_v0 = vld [vmem:[%s721_s1] sm:$0xff]   ;;  %v611_v1 = vld [vmem:[%s721_s1 + $0x8] sm:$0xff]   ;;  %v612_v2 = vld [vmem:[%s721_s1 + $0x10] sm:$0xff]  }
   0x2   :  { %562 = vmatprep.subr.bf16.mxu0 %v610_v0  ;;  %594 = vmatprep.subr.bf16.mxu1 %v610_v0  ;;  %v613_v3 = vld [vmem:[%s721_s1 + $0x18] sm:$0xff]   ;;  %v618_v4 = vld [vmem:[%s722_s0] sm:$0xff]   ;;  %v615_v7 = vld [vmem:[%s721_s1 + $0x28] sm:$0xff]  }
   0x3   :  { %563 = vmatpush3.bf16.msra.mxu0 %v610_v0  ;;  %602 = vmatpush3.bf16.msra.mxu1 %v610_v0  ;;  %v619_v5 = vld [vmem:[%s722_s0 + $0x20] sm:$0xff]   ;;  %v616_v8 = vld [vmem:[%s721_s1 + $0x30] sm:$0xff]   ;;  %v617_v9 = vld [vmem:[%s721_s1 + $0x38] sm:$0xff]  }
   0x4   :  { %564 = vmatprep.subr.bf16.mxu0 %v611_v1  ;;  %595 = vmatprep.subr.bf16.mxu1 %v611_v1  ;;  %v614_v6 = vld [vmem:[%s721_s1 + $0x20] sm:$0xff]   ;;  %v620_v10 = vld [vmem:[%s722_s0 + $0x8] sm:$0xff]   ;;  %v622_v12 = vld [vmem:[%s722_s0 + $0x10] sm:$0xff]  }
   0x5   :  { %578 = vmatprep.mubr.bf16.mxu0 %v618_v4  ;;  %586 = vmatprep.mubr.bf16.mxu1 %v619_v5  ;;  %v621_v11 = vld [vmem:[%s722_s0 + $0x28] sm:$0xff]   ;;  %v623_v13 = vld [vmem:[%s722_s0 + $0x30] sm:$0xff]   ;;  %v624_v14 = vld [vmem:[%s722_s0 + $0x18] sm:$0xff]  }
   0x6   :  { %v625_v15 = vld [vmem:[%s722_s0 + $0x38] sm:$0xff]   ;;  %v466_v16 = vld [vmem:[%s723_s2] ss:$0 sm:$0xff] }
   0x7   :  { %565 = vmatpush3.bf16.msra.mxu0 %v611_v1  ;;  %603 = vmatpush3.bf16.msra.mxu1 %v611_v1 }
   0x8   :  { %566 = vmatprep.subr.bf16.mxu0 %v612_v2  ;;  %596 = vmatprep.subr.bf16.mxu1 %v612_v2 }
   0xb   :  { %567 = vmatpush3.bf16.msra.mxu0 %v612_v2  ;;  %604 = vmatpush3.bf16.msra.mxu1 %v612_v2 }
   0xc   :  { %568 = vmatprep.subr.bf16.mxu0 %v613_v3  ;;  %597 = vmatprep.subr.bf16.mxu1 %v613_v3 }
   0xf   :  { %569 = vmatpush3.bf16.msra.mxu0 %v613_v3  ;;  %605 = vmatpush3.bf16.msra.mxu1 %v613_v3 }
  0x10   :  { %570 = vmatprep.subr.bf16.mxu0 %v614_v6  ;;  %598 = vmatprep.subr.bf16.mxu1 %v614_v6 }
  0x13   :  { %571 = vmatpush3.bf16.msra.mxu0 %v614_v6  ;;  %606 = vmatpush3.bf16.msra.mxu1 %v614_v6 }
  0x14   :  { %572 = vmatprep.subr.bf16.mxu0 %v615_v7  ;;  %599 = vmatprep.subr.bf16.mxu1 %v615_v7 }
  0x17   :  { %573 = vmatpush3.bf16.msra.mxu0 %v615_v7  ;;  %607 = vmatpush3.bf16.msra.mxu1 %v615_v7 }
  0x18   :  { %574 = vmatprep.subr.bf16.mxu0 %v616_v8  ;;  %600 = vmatprep.subr.bf16.mxu1 %v616_v8 }
  0x1b   :  { %575 = vmatpush3.bf16.msra.mxu0 %v616_v8  ;;  %608 = vmatpush3.bf16.msra.mxu1 %v616_v8 }
  0x1c   :  { %576 = vmatprep.subr.bf16.mxu0 %v617_v9  ;;  %601 = vmatprep.subr.bf16.mxu1 %v617_v9 }
  0x1f   :  { %577 = vmatpush3.bf16.msra.mxu0 %v617_v9  ;;  %609 = vmatpush3.bf16.msra.mxu1 %v617_v9 }
  0x22   :  { %579 = vmatmul.mubr.bf16.vlgmr.msra.gmra.mrb[0].mxu0 %v620_v10  ;;  %587 = vmatmul.mubr.bf16.vlgmr.msra.gmra.mrb[0].mxu1 %v621_v11 }
  0x23   :  { %582 = vmatprep.mubr.bf16.mxu0 %v622_v12  ;;  %590 = vmatprep.mubr.bf16.mxu1 %v623_v13 }
  0x2a   :  { %583 = vmatmul.mubr.bf16.gmra.mrb[4].mxu0 %v624_v14  ;;  %591 = vmatmul.mubr.bf16.gmra.mrb[4].mxu1 %v625_v15 }
  0xf5   :  { %v580_v17 = vpop.f32.mrb[0].mxu0  ;;  %v588_v18 = vpop.f32.mrb[0].mxu1 }
  0xf6   :  { %v336_v19 = vadd.f32 %v580_v17, %v466_v16  ;;  %v344_v20 = vadd.f32 %v588_v18, %v466_v16  ;;  %v213_v21 = vpop.f32.mrb[1].mxu0  ;;  %v245_v22 = vpop.f32.mrb[1].mxu1 }
  0xf7   :  { %v334_v23 = vadd.f32 %v466_v16, %v213_v21  ;;  %v342_v24 = vadd.f32 %v466_v16, %v245_v22  ;;  %v581_v25 = vpop.f32.mrb[2].mxu0  ;;  %v589_v26 = vpop.f32.mrb[2].mxu1 }
  0xf8   :  { %v337_v27 = vadd.f32 %v581_v25, %v466_v16  ;;  %v345_v28 = vadd.f32 %v589_v26, %v466_v16  ;;  %v216_v29 = vpop.f32.mrb[3].mxu0  ;;  %v248_v30 = vpop.f32.mrb[3].mxu1  ;;  %v352_v33 = vmax.f32 %v336_v19, 0.0  ;;  %v360_v34 = vmax.f32 %v344_v20, 0.0 }
  0xf9   :  { %v335_v31 = vadd.f32 %v466_v16, %v216_v29  ;;  %v343_v32 = vadd.f32 %v466_v16, %v248_v30  ;;  %v350_v37 = vmax.f32 %v334_v23, 0.0  ;;  %v358_v38 = vmax.f32 %v342_v24, 0.0 }
  0xfa   :  { %v353_v35 = vmax.f32 %v337_v27, 0.0  ;;  %v361_v36 = vmax.f32 %v345_v28, 0.0 }
  0xfb   :  { %v351_v39 = vmax.f32 %v335_v31, 0.0  ;;  %v359_v40 = vmax.f32 %v343_v32, 0.0 }
  0xfc   :  { %v507_v41 = vpack.c.bf16 %v353_v35, %v352_v33  ;;  %v527_v42 = vpack.c.bf16 %v361_v36, %v360_v34 }
  0xfd   :  { %v502_v43 = vpack.c.bf16 %v351_v39, %v350_v37  ;;  %v522_v44 = vpack.c.bf16 %v359_v40, %v358_v38  ;;  %v584_v45 = vpop.f32.mrb[4].mxu0  ;;  %v592_v46 = vpop.f32.mrb[4].mxu1 }
  0xfe   :  { %539 = vst [vmem:[%s724_s3 + $0x8] sm:$0xff] %v507_v41   ;;  %543 = vst [vmem:[%s724_s3 + $0x28] sm:$0xff] %v527_v42   ;;  %v340_v47 = vadd.f32 %v584_v45, %v466_v16  ;;  %v348_v48 = vadd.f32 %v592_v46, %v466_v16  ;;  %v229_v49 = vpop.f32.mrb[5].mxu0  ;;  %v261_v50 = vpop.f32.mrb[5].mxu1 }
  0xff   :  { %503 = vst [vmem:[%s724_s3] sm:$0xff] %v502_v43   ;;  %542 = vst [vmem:[%s724_s3 + $0x20] sm:$0xff] %v522_v44   ;;  %v338_v51 = vadd.f32 %v466_v16, %v229_v49  ;;  %v346_v52 = vadd.f32 %v466_v16, %v261_v50  ;;  %v585_v53 = vpop.f32.mrb[6].mxu0  ;;  %v593_v54 = vpop.f32.mrb[6].mxu1 }
 0x100   :  { %v341_v55 = vadd.f32 %v585_v53, %v466_v16  ;;  %v349_v56 = vadd.f32 %v593_v54, %v466_v16  ;;  %v232_v57 = vpop.f32.mrb[7].mxu0  ;;  %v264_v58 = vpop.f32.mrb[7].mxu1  ;;  %v356_v61 = vmax.f32 %v340_v47, 0.0  ;;  %v364_v62 = vmax.f32 %v348_v48, 0.0 }
 0x101   :  { %v339_v59 = vadd.f32 %v466_v16, %v232_v57  ;;  %v347_v60 = vadd.f32 %v466_v16, %v264_v58  ;;  %v354_v1 = vmax.f32 %v338_v51, 0.0  ;;  %v362_v2 = vmax.f32 %v346_v52, 0.0 }
 0x102   :  { %v357_v63 = vmax.f32 %v341_v55, 0.0  ;;  %v365_v0 = vmax.f32 %v349_v56, 0.0 }
 0x103   :  { %v355_v3 = vmax.f32 %v339_v59, 0.0  ;;  %v363_v4 = vmax.f32 %v347_v60, 0.0 }
 0x104   :  { %v517_v5 = vpack.c.bf16 %v357_v63, %v356_v61  ;;  %v537_v6 = vpack.c.bf16 %v365_v0, %v364_v62 }
 0x105   :  { %v512_v7 = vpack.c.bf16 %v355_v3, %v354_v1  ;;  %v532_v8 = vpack.c.bf16 %v363_v4, %v362_v2 }
 0x106   :  { %541 = vst [vmem:[%s724_s3 + $0x18] sm:$0xff] %v517_v5   ;;  %545 = vst [vmem:[%s724_s3 + $0x38] sm:$0xff] %v537_v6  }
 0x107   :  { %540 = vst [vmem:[%s724_s3 + $0x10] sm:$0xff] %v512_v7   ;;  %544 = vst [vmem:[%s724_s3 + $0x30] sm:$0xff] %v532_v8  }

</bundles_post_ra>
